<compile_context>
chip_gen: v7x
topology: tpu7x:2x2x1
jax: 0.10.0
libtpu: 0.0.40
codegen_flags: <defaults>
</compile_context>

<pallas_src>
import functools
import math

import numpy as np
import jax
import jax.numpy as jnp
from jax import lax
from jax.experimental import pallas as pl
from jax.experimental.pallas import tpu as pltpu

_SQRT_2 = math.sqrt(2.0)
_SQRT_2_OVER_PI = math.sqrt(2.0 / math.pi)
_SELU_ALPHA = 1.6732632423543772848170429916717
_SELU_SCALE = 1.0507009873554804934193349852946

_DEFAULT_BLOCK_BYTES = 2 * 1024 * 1024     # v5e/v6e: 4 live buffers << 16 MiB scoped default
_DEFAULT_VMEM_LIMIT = 32 * 1024 * 1024     # safe everywhere (v7x physical = 64 MiB)


def _cdiv(a, b):
    return -(-a // b)


def _round_up(a, m):
    return _cdiv(a, m) * m


@functools.lru_cache(maxsize=None)
def _chip_config():
    """(target_block_bytes, vmem_limit_bytes, tensorcores_per_chip)."""
    target = _DEFAULT_BLOCK_BYTES
    vmem_limit = _DEFAULT_VMEM_LIMIT
    num_tc = 1
    try:
        info = pltpu.get_tpu_info()
        cap = int(getattr(info, 'vmem_capacity_bytes', 0) or 0)
        if cap:
            if cap <= 72 * 1024 * 1024:
                # v7x-class: 64 MiB VMEM/TC, 3.2 TB/s HBM, 2 TensorCores/chip.
                # Bigger blocks keep the ~0.35us grid-step overhead hidden.
                target = 4 * 1024 * 1024
                num_tc = 2
            vmem_limit = min(cap // 2, 64 * 1024 * 1024)
    except Exception:
        pass
    return target, vmem_limit, num_tc


# ----------------------------- kernels ------------------------------------ #
def _elementwise_kernel(fn, upcast, x_ref, o_ref):
    x = x_ref[...]
    if upcast:
        # TODO(synk): on v6e/v7x bf16 inputs could skip this upcast (native
        # bf16 EUP); kept for cross-generation numerical parity with PyTorch.
        x = x.astype(jnp.float32)
    o_ref[...] = fn(x).astype(o_ref.dtype)


def _prelu_kernel(x_ref, w_ref, o_ref):
    # scalar PReLU weight (PyTorch default num_parameters=1) as a (1,1) block
    x = x_ref[...]
    w = w_ref[0, 0].astype(x.dtype)
    o_ref[...] = jnp.where(x >= 0, x, w * x).astype(o_ref.dtype)


def _softmax_lane_kernel(x_ref, o_ref):
    x = x_ref[...].astype(jnp.float32)
    m = jnp.max(x, axis=-1, keepdims=True)
    e = jnp.exp(x - m)
    s = jnp.sum(e, axis=-1, keepdims=True)
    o_ref[...] = (e * pl.reciprocal(s, approx=False)).astype(o_ref.dtype)


def _softmax_mid_kernel(x_ref, o_ref):
    # softmax over axis=1 of a (bpre, D, bpost) tile: sublane-axis reduce (XLU),
    # avoids an external HBM transpose when the softmax dim is not the lane axis.
    x = x_ref[...].astype(jnp.float32)
    m = jnp.max(x, axis=1, keepdims=True)
    e = jnp.exp(x - m)
    s = jnp.sum(e, axis=1, keepdims=True)
    o_ref[...] = (e * pl.reciprocal(s, approx=False)).astype(o_ref.dtype)


def _glu_fullwidth_kernel(x_ref, o_ref):
    n = x_ref.shape[-1] // 2
    a = x_ref[:, :n].astype(jnp.float32)
    b = x_ref[:, n:].astype(jnp.float32)
    o_ref[...] = (a * pl.reciprocal(1.0 + jnp.exp(-b), approx=False)).astype(o_ref.dtype)


def _glu_split_kernel(a_ref, b_ref, o_ref):
    a = a_ref[...].astype(jnp.float32)
    b = b_ref[...].astype(jnp.float32)
    o_ref[...] = (a * pl.reciprocal(1.0 + jnp.exp(-b), approx=False)).astype(o_ref.dtype)


def _elementwise_fn(act_type, kwargs):
    """Returns (fn, needs_f32_upcast). Only transcendental-based ops upcast."""
    if act_type == 'relu':
        return (lambda x: jnp.maximum(x, 0.0)), False
    if act_type == 'relu6':
        return (lambda x: jnp.clip(x, 0.0, 6.0)), False
    if act_type == 'leakyrelu':
        slope = float(kwargs.get('negative_slope', 0.01))
        return (lambda x: jnp.where(x >= 0, x, slope * x)), False
    if act_type == 'hardswish':
        return (lambda x: x * jnp.clip(x + 3.0, 0.0, 6.0) * (1.0 / 6.0)), False
    if act_type == 'hardtanh':
        lo = float(kwargs.get('min_val', -1.0))
        hi = float(kwargs.get('max_val', 1.0))
        return (lambda x: jnp.clip(x, lo, hi)), False
    if act_type == 'celu':
        alpha = float(kwargs.get('alpha', 1.0))
        return (lambda x: jnp.maximum(x, 0.0)
                + jnp.minimum(0.0, alpha * (jnp.exp(x / alpha) - 1.0))), True
    if act_type == 'elu':
        alpha = float(kwargs.get('alpha', 1.0))
        return (lambda x: jnp.where(x > 0.0, x, alpha * (jnp.exp(x) - 1.0))), True
    if act_type == 'gelu':
        approximate = str(kwargs.get('approximate', 'none')).lower()
        if approximate == 'tanh':
            return (lambda x: 0.5 * x * (1.0 + jnp.tanh(
                _SQRT_2_OVER_PI * (x + 0.044715 * x * x * x)))), True
        # PyTorch default approximate='none' -> exact erf formulation
        return (lambda x: 0.5 * x * (1.0 + lax.erf(x * (1.0 / _SQRT_2)))), True
    if act_type == 'selu':
        return (lambda x: _SELU_SCALE * (jnp.maximum(x, 0.0)
                + jnp.minimum(0.0, _SELU_ALPHA * (jnp.exp(x) - 1.0)))), True
    if act_type == 'silu':
        return (lambda x: x * pl.reciprocal(1.0 + jnp.exp(-x), approx=False)), True
    if act_type == 'sigmoid':
        return (lambda x: pl.reciprocal(1.0 + jnp.exp(-x), approx=False)), True
    if act_type == 'tanh':
        return jnp.tanh, True
    if act_type == 'none':
        return (lambda x: x), False
    return None, False


# pure-jnp equivalents for the optional fuse=True fast path (VPU-trivial only,
# no pl.* primitives so they can run outside a kernel and fuse into producers)
def _fused_fn(act_type, kwargs):
    if act_type == 'silu':
        return jax.nn.silu
    if act_type == 'sigmoid':
        return jax.nn.sigmoid
    fn, _ = _elementwise_fn(act_type, kwargs)
    return fn


# ----------------------------- layout helpers ------------------------------ #
def _lane_dense_2d(total):
    """Pick (rows, cols) with cols a large multiple of 128 that divides total."""
    for cols in (4096, 2048, 1024, 512, 256, 128):
        if total % cols == 0 and total // cols >= 8:
            return total // cols, cols
    for cols in (4096, 2048, 1024, 512, 256, 128):
        if total % cols == 0:
            return total // cols, cols
    return None


def _block_rows(rows, cols, itemsize, target_bytes, num_tc):
    """Byte-budget row-block size (multiple of 8); used with a cdiv grid."""
    row_bytes = max(1, cols * itemsize)
    br = (target_bytes // row_bytes) // 8 * 8
    br = max(8, br)
    if br >= rows:
        if num_tc > 1 and rows >= 32:
            # 2-TC chip (v7x): split into >=4 even blocks so both cores work
            return max(8, _round_up(_cdiv(rows, 4), 8))
        return rows  # single-TC: one block, no extra grid-step overhead
    if num_tc > 1:
        n = _cdiv(rows, br)
        if n > 1 and n % 2 == 1:
            br = max(8, _round_up(_cdiv(rows, n + 1), 8))  # even grid for 2 TCs
    return br


# ----------------------------- module ------------------------------------- #
class Activation:
    """JAX/Pallas mirror of the PyTorch Activation wrapper."""

    _HUB = {'relu', 'relu6', 'leakyrelu', 'prelu', 'celu', 'elu', 'hardswish',
            'hardtanh', 'gelu', 'glu', 'selu', 'silu', 'sigmoid', 'softmax',
            'tanh', 'none'}
    # trivial VPU-only ops that XLA can fuse into their producer when fuse=True
    _FUSABLE = {'relu', 'relu6', 'leakyrelu', 'hardtanh', 'hardswish',
                'prelu', 'silu', 'sigmoid', 'none'}

    def __init__(self, act_type, **kwargs):
        act_type = act_type.lower()
        if act_type not in self._HUB:
            raise NotImplementedError(f'Unsupport activation type: {act_type}')
        self.act_type = act_type
        self.fuse = bool(kwargs.pop('fuse', False))
        self.kwargs = kwargs
        self.prelu_weight = None
        if act_type == 'prelu':
            num_p = int(kwargs.get('num_parameters', 1))
            init = float(kwargs.get('init', 0.25))
            if num_p != 1:
                # TODO(synk): per-channel PReLU needs a channel-indexed weight broadcast
                raise NotImplementedError('only scalar PReLU weight supported')
            self.prelu_weight = jnp.full((1, 1), init, dtype=jnp.float32)

    # ---- generic row-blocked 2D launcher (cdiv grid, byte-budget blocks) ---- #
    def _run2d(self, kernel, x2, out_cols, extra=None, block_scale=1.0):
        rows, cols = x2.shape
        target, vmem_limit, num_tc = _chip_config()
        itemsize = jnp.dtype(x2.dtype).itemsize
        br = _block_rows(rows, max(cols, out_cols), itemsize,
                         max(8 * 128 * itemsize, int(target * block_scale)), num_tc)
        grid = (_cdiv(rows, br),)
        in_specs = [pl.BlockSpec((br, cols), lambda i: (i, 0))]
        args = [x2]
        if extra is not None:
            arr, spec = extra
            in_specs.append(spec)
            args.append(arr)
        return pl.pallas_call(
            kernel,
            out_shape=jax.ShapeDtypeStruct((rows, out_cols), x2.dtype),
            grid=grid,
            in_specs=in_specs,
            out_specs=pl.BlockSpec((br, out_cols), lambda i: (i, 0)),
            compiler_params=pltpu.CompilerParams(
                dimension_semantics=("parallel",),
                vmem_limit_bytes=vmem_limit),
        )(*args)

    # ---- elementwise path: lane-dense flatten of the whole tensor ---------- #
    def _run_flat(self, kernel, x, extra=None):
        shape = x.shape
        total = int(np.prod(shape)) if len(shape) else 1
        if total == 0:
            return x
        if total % 128 == 0:
            rows, cols = _lane_dense_2d(total)
            x2 = x.reshape(rows, cols)
            out2 = self._run2d(kernel, x2, cols, extra=extra)
            return out2.reshape(shape)
        # awkward length: pad flat to a lane-dense multiple, run, slice back
        # (keeps unmasked 128-lane stores instead of a narrow last dim).
        padded = _round_up(total, 1024) if total >= 8 * 1024 else _round_up(total, 128)
        xf = jnp.pad(x.reshape(-1), (0, padded - total))
        rows, cols = _lane_dense_2d(padded)
        out2 = self._run2d(kernel, xf.reshape(rows, cols), cols, extra=extra)
        return out2.reshape(-1)[:total].reshape(shape)

    # ---- GLU ---------------------------------------------------------------- #
    def _glu(self, x):
        shape = x.shape
        cols = shape[-1]
        assert cols % 2 == 0, 'GLU requires an even last dimension'
        n = cols // 2
        rows = int(np.prod(shape[:-1])) if x.ndim > 1 else 1
        x2 = x.reshape(rows, cols)
        target, vmem_limit, num_tc = _chip_config()
        itemsize = jnp.dtype(x.dtype).itemsize
        if n % 128 == 0:
            # lane-aligned halves: BlockSpecs DMA them (no in-kernel slices).
            # 3 streams x 2 buffers = 6 live blocks -> halve the byte budget
            # so v5e's 16 MiB scoped VMEM stays safe.
            br = _block_rows(rows, cols, itemsize, max(8 * 128 * itemsize, target // 2),
                             num_tc)
            out2 = pl.pallas_call(
                _glu_split_kernel,
                out_shape=jax.ShapeDtypeStruct((rows, n), x2.dtype),
                grid=(_cdiv(rows, br),),
                in_specs=[pl.BlockSpec((br, n), lambda i: (i, 0)),
                          pl.BlockSpec((br, n), lambda i: (i, 1))],
                out_specs=pl.BlockSpec((br, n), lambda i: (i, 0)),
                compiler_params=pltpu.CompilerParams(
                    dimension_semantics=("parallel",),
                    vmem_limit_bytes=vmem_limit),
            )(x2, x2)
        else:
            # TODO(synk): small/odd half-widths cannot be lane-densified without
            # a transpose; full-width block + in-kernel split is used instead.
            out2 = self._run2d(_glu_fullwidth_kernel, x2, n)
        return out2.reshape(shape[:-1] + (n,))

    # ---- Softmax ------------------------------------------------------------ #
    def _softmax(self, x):
        dim = self.kwargs.get('dim', None)
        if dim is None:
            # match torch.nn.functional._get_softmax_dim
            dim = 0 if x.ndim in (0, 1, 3) else 1
        dim = dim % max(x.ndim, 1)
        shape = x.shape
        target, vmem_limit, num_tc = _chip_config()
        itemsize = jnp.dtype(x.dtype).itemsize

        if x.ndim <= 1 or dim == x.ndim - 1:
            cols = shape[-1] if x.ndim else 1
            rows = int(np.prod(shape[:-1])) if x.ndim > 1 else 1
            x2 = x.reshape(rows, cols)
            out2 = self._run2d(_softmax_lane_kernel, x2, cols)
            return out2.reshape(shape)

        # softmax over a non-lane axis: keep the layout, reduce axis=1 in-kernel
        D = shape[dim]
        pre = int(np.prod(shape[:dim])) if dim > 0 else 1
        post = int(np.prod(shape[dim + 1:]))
        x3 = x.reshape(pre, D, post)
        budget = min(target, 2 * 1024 * 1024)
        if post > 128 and post % 128 == 0:
            # cap the lane block (multiple of 128) so D*bpost*itemsize <= budget
            max_lanes = max(1, budget // max(1, D * 128 * itemsize))
            bpost = 128 * min(post // 128, max_lanes, 8)
        else:
            bpost = post                       # full dim is always a legal block
        bpre = max(1, budget // max(1, D * bpost * itemsize))
        bpre = min(bpre, pre)
        out3 = pl.pallas_call(
            _softmax_mid_kernel,
            out_shape=jax.ShapeDtypeStruct((pre, D, post), x.dtype),
            grid=(_cdiv(pre, bpre), _cdiv(post, bpost)),
            in_specs=[pl.BlockSpec((bpre, D, bpost), lambda i, j: (i, 0, j))],
            out_specs=pl.BlockSpec((bpre, D, bpost), lambda i, j: (i, 0, j)),
            compiler_params=pltpu.CompilerParams(
                dimension_semantics=("parallel", "parallel"),
                vmem_limit_bytes=vmem_limit),
        )(x3)
        return out3.reshape(shape)

    # ---- forward ------------------------------------------------------------ #
    def __call__(self, x):
        act = self.act_type
        if act == 'none':
            return x                      # identity: no HBM round trip
        if self.fuse and act in self._FUSABLE:
            # pure-jnp path so XLA can fuse the activation into its producer
            if act == 'prelu':
                w = self.prelu_weight[0, 0].astype(x.dtype)
                return jnp.where(x >= 0, x, w * x)
            return _fused_fn(act, self.kwargs)(x)
        if act == 'glu':
            return self._glu(x)
        if act == 'softmax':
            return self._softmax(x)
        if act == 'prelu':
            extra = (self.prelu_weight, pl.BlockSpec((1, 1), lambda i: (0, 0)))
            return self._run_flat(_prelu_kernel, x, extra=extra)
        fn, needs_f32 = _elementwise_fn(act, self.kwargs)
        kernel = functools.partial(_elementwise_kernel, fn, needs_f32)
        return self._run_flat(kernel, x)


# ------------------------------ main --------------------------------------- #
if __name__ == "__main__":
    key = jax.random.PRNGKey(0)
    k1, k2, k3 = jax.random.split(key, 3)
    x = jax.random.normal(k1, (2, 4, 16, 16), dtype=jnp.float32)  # NCHW

    refs = {
        'relu':      lambda v: jnp.maximum(v, 0.0),
        'relu6':     lambda v: jnp.clip(v, 0.0, 6.0),
        'leakyrelu': lambda v: jnp.where(v >= 0, v, 0.01 * v),
        'gelu':      lambda v: jax.nn.gelu(v, approximate=False),
        'hardswish': lambda v: v * jnp.clip(v + 3.0, 0.0, 6.0) / 6.0,
        'silu':      jax.nn.silu,
        'sigmoid':   jax.nn.sigmoid,
        'tanh':      jnp.tanh,
        'elu':       jax.nn.elu,
        'selu':      jax.nn.selu,
        'celu':      jax.nn.celu,
        'hardtanh':  lambda v: jnp.clip(v, -1.0, 1.0),
        'none':      lambda v: v,
    }
    for name, ref in refs.items():
        out = jax.block_until_ready(Activation(name)(x))
        np.testing.assert_allclose(np.asarray(out), np.asarray(ref(x)),
                                   rtol=1e-5, atol=1e-5)

    # 'none' is a true identity (no kernel launch)
    assert Activation('none')(x) is x

    # awkward (non multiple-of-128) flattened length -> padded lane-dense path
    xa = jax.random.normal(k3, (3, 5, 7), dtype=jnp.float32)
    for name in ('relu', 'gelu', 'silu'):
        out = jax.block_until_ready(Activation(name)(xa))
        np.testing.assert_allclose(np.asarray(out), np.asarray(refs[name](xa)),
                                   rtol=1e-5, atol=1e-5)
        assert out.shape == xa.shape

    # fuse=True fast path (pure jnp, lets XLA fuse into the producer)
    out = jax.block_until_ready(Activation('relu', fuse=True)(x))
    np.testing.assert_allclose(np.asarray(out), np.asarray(refs['relu'](x)),
                               rtol=1e-5, atol=1e-5)

    # PReLU (scalar weight, default init 0.25)
    out = jax.block_until_ready(Activation('prelu')(x))
    np.testing.assert_allclose(np.asarray(out),
                               np.asarray(jnp.where(x >= 0, x, 0.25 * x)),
                               rtol=1e-5, atol=1e-5)

    # GELU tanh approximation (PyTorch approximate='tanh')
    out = jax.block_until_ready(Activation('gelu', approximate='tanh')(x))
    np.testing.assert_allclose(np.asarray(out),
                               np.asarray(jax.nn.gelu(x, approximate=True)),
                               rtol=1e-4, atol=1e-5)

    # Softmax over last (lane) axis
    out = jax.block_until_ready(Activation('softmax', dim=-1)(x))
    np.testing.assert_allclose(np.asarray(out),
                               np.asarray(jax.nn.softmax(x, axis=-1)),
                               rtol=1e-5, atol=1e-5)

    # Softmax with PyTorch's default dim resolution for 4-D (dim=1, non-lane axis)
    out = jax.block_until_ready(Activation('softmax')(x))
    np.testing.assert_allclose(np.asarray(out),
                               np.asarray(jax.nn.softmax(x, axis=1)),
                               rtol=1e-5, atol=1e-5)

    # GLU over last axis (small half-width -> full-width block, in-kernel split)
    out = jax.block_until_ready(Activation('glu')(x))
    a, b = jnp.split(x, 2, axis=-1)
    np.testing.assert_allclose(np.asarray(out),
                               np.asarray(a * jax.nn.sigmoid(b)),
                               rtol=1e-5, atol=1e-5)
    assert out.shape == (2, 4, 16, 8)

    # GLU with lane-aligned halves (BlockSpec-split path)
    xg = jax.random.normal(k2, (2, 4, 16, 256), dtype=jnp.float32)
    out = jax.block_until_ready(Activation('glu')(xg))
    ag, bg = jnp.split(xg, 2, axis=-1)
    np.testing.assert_allclose(np.asarray(out),
                               np.asarray(ag * jax.nn.sigmoid(bg)),
                               rtol=1e-5, atol=1e-5)
    assert out.shape == (2, 4, 16, 128)

    print("KERNEL_OK")
</pallas_src>

<mosaic_0001>
module attributes {stable_mosaic.version = 11 : i64} {
  func.func @_elementwise_kernel(%arg0: i32, %arg1: memref<8x256xf32, #tpu.memory_space<vmem>>, %arg2: memref<8x256xf32, #tpu.memory_space<vmem>>) attributes {dimension_semantics = [#tpu.dimension_semantics<parallel>], iteration_bounds = array<i64: 1>, scalar_prefetch = 0 : i64, scratch_operands = 0 : i64, tpu.core_type = #tpu.core_type<tc>, window_params = [{transform_indices = @transform_0, window_bounds = array<i64: 8, 256>}, {transform_indices = @transform_1, window_bounds = array<i64: 8, 256>}]} {
    %c0 = arith.constant 0 : index
    %c0_0 = arith.constant 0 : index
    %0 = vector.load %arg1[%c0, %c0_0] : memref<8x256xf32, #tpu.memory_space<vmem>>, vector<8x256xf32>
    %cst = arith.constant 0.000000e+00 : f32
    %1 = vector.broadcast %cst : f32 to vector<8x256xf32>
    %2 = arith.maximumf %0, %1 : vector<8x256xf32>
    %c0_1 = arith.constant 0 : index
    %c0_2 = arith.constant 0 : index
    %3 = vector.load %arg2[%c0_1, %c0_2] : memref<8x256xf32, #tpu.memory_space<vmem>>, vector<8x256xf32>
    tpu.vector_store %arg2[%c0_1, %c0_2], %2 {strides = array<i32>} : memref<8x256xf32, #tpu.memory_space<vmem>>, vector<8x256xf32>,
    return
  }
  func.func @transform_0(%arg0: i32) -> (i32, i32) {
    %c0_i32 = arith.constant 0 : i32
    %c0_i32_0 = arith.constant 0 : i32
    return %arg0, %c0_i32 : i32, i32
  }
  func.func @transform_1(%arg0: i32) -> (i32, i32) {
    %c0_i32 = arith.constant 0 : i32
    %c0_i32_0 = arith.constant 0 : i32
    return %arg0, %c0_i32 : i32, i32
  }
}

</mosaic_0001>

<bundles_post_ra>
// kernel: tpu_custom_call.1
= control target key start
LH: loop header
LB: loop body
LE: loop exit
PB: predicated region body
PF: predicated region fallthrough
CT: control target
= control target key end

     0   :  { %6 = vsyncpa [#allocation3], 0  ;;  %s128_s0 = inlined_call_operand.hbm [shape: f32[8,256], index: 0, kind: input, shape index: {}]   ;;  %s129_s1 = inlined_call_operand.hbm [shape: f32[8,256], index: 1, kind: output, shape index: {}]  }
   0x1   :  { %7 = vsyncpa [#allocation4], 0  ;;  %s92_s6 = smov [#allocation2]   ;;  %s44_s10 = scalar_lea.hbm %s128_s0, 256 }
   0x2   :  { %s14_s7 = sshll.u32 %s92_s6, 4  ;;  %p45_p0 = scmp.ne.s32.totalorder %s128_s0, %s44_s10  ;;  %s15_s7 = int_to_ptr.vmem [resolvable:$true] %s14_s7 }
   0x3   :  { %p48_p1 = scmp.lt.u32.totalorder %s44_s10, %s128_s0 }
   0x5   :  { %p50_p2 = pnand %p48_p1, %p45_p0 }
   0x7   :  { %53 = shalt.err (!%p50_p2)
}
   0x8   :  { %s54_s15 = scalar_lea.vmem %s15_s7, 256  ;;  %p59_p4 = scmp.lt.s32.totalorder %s15_s7, %s15_s7 }
   0x9   :  { %p55_p3 = scmp.ne.s32.totalorder %s15_s7, %s54_s15  ;;  %p60_p5 = scmp.lt.s32.totalorder %s54_s15, %s54_s15 }
   0xb   :  { %p61_p6 = por %p60_p5, %p59_p4 }
   0xd   :  { %p62_p7 = pnand %p61_p6, %p55_p3 }
   0xf   :  { %65 = shalt.err (!%p62_p7)
}
  0x10   :  { %17 = dma.hbm_to_vmem [thread:$0]  %s128_s0, 256, %s15_s7, [#allocation3]  }
  0x11   :  { %88 = dma.done.wait [#allocation3], 256  }
  0x12   :  { %89 = vsyncadd [#allocation3], 4294967040  ;;  %s93_s18 = smov [#allocation5]   ;;  %v21_v0 = vld [vmem:[#allocation2] sm:$0xff]  ;;  %v22_v1 = vld [vmem:[#allocation2 + $0x8] sm:$0xff] }
  0x13   :  { %s33_s19 = sshll.u32 %s93_s18, 4  ;;  %v23_v2 = vmax.f32 %v21_v0, 0.0  ;;  %v24_v3 = vmax.f32 %v22_v1, 0.0  ;;  %s34_s19 = int_to_ptr.vmem [resolvable:$true] %s33_s19 }
  0x14   :  { %s66_s20 = scalar_lea.vmem %s34_s19, 256  ;;  %p71_p9 = scmp.lt.s32.totalorder %s34_s19, %s34_s19 }
  0x15   :  { %25 = vst [vmem:[#allocation5] sm:$0xff] %v23_v2  ;;  %26 = vst [vmem:[#allocation5 + $0x8] sm:$0xff] %v24_v3  ;;  %p67_p8 = scmp.ne.s32.totalorder %s34_s19, %s66_s20  ;;  %p72_p10 = scmp.lt.s32.totalorder %s66_s20, %s66_s20 }
  0x17   :  { %p73_p11 = por %p72_p10, %p71_p9 }
  0x19   :  { %p74_p12 = pnand %p73_p11, %p67_p8 }
  0x1b   :  { %77 = shalt.err (!%p74_p12)
}
  0x1c   :  { %s78_s22 = scalar_lea.hbm %s129_s1, 256 }
  0x1d   :  { %p79_p13 = scmp.ne.s32.totalorder %s129_s1, %s78_s22  ;;  %p82_p0 = scmp.lt.u32.totalorder %s78_s22, %s129_s1 }
  0x1f   :  { %p84_p1 = pnand %p82_p0, %p79_p13 }
  0x21   :  { %87 = shalt.err (!%p84_p1)
}
  0x22   :  { %36 = dma.vmem_to_hbm [thread:$0]  %s34_s19, 256, %s129_s1, [#allocation4]  }
  0x23   :  { %90 = dma.done.wait [#allocation4], 256  }
  0x24   :  { %91 = vsyncadd [#allocation4], 4294967040 }
  0x25   :  { %40 = vsyncpa [#allocation3], 1 }
  0x26   :  { %41 = vsyncpa [#allocation4], 1 }

</bundles_post_ra>
